<compile_context>
chip_gen: v7x
topology: tpu7x:2x2x1
jax: 0.10.0
libtpu: 0.0.40
codegen_flags: <defaults>
</compile_context>

<pallas_src>
import math

import jax
import jax.numpy as jnp
from jax.experimental import pallas as pl
from jax.experimental.pallas import tpu as pltpu


_SQRT_2_OVER_PI = 0.7978845608028654


def _gelu_tanh(x):
    # tanh approximation of GELU (== jax.nn.gelu(approximate=True)).
    # NOTE: torch.nn.GELU() defaults to the exact erf form; the tanh variant
    # deviates by <~1e-3 abs and keeps the transcendental on the EUP (tanh).
    return 0.5 * x * (1.0 + jnp.tanh(_SQRT_2_OVER_PI * (x + 0.044715 * x * x * x)))


# ---------------------------------------------------------------------------
# Weight assembly (mirrors Conv2d_cd / Conv2d_hd / Conv2d_vd get_weight()).
# These run on tiny weight tensors in plain JAX.
# ---------------------------------------------------------------------------
def _cd_weight(w):  # (C,1,3,3) -> (C,1,3,3): center tap -> w4 - sum(all taps)
    C = w.shape[0]
    wf = w.reshape(C, 1, 9)
    wf = wf.at[:, :, 4].add(-wf.sum(axis=2))
    return wf.reshape(C, 1, 3, 3)


def _hd_weight(w):  # (C,1,3) -> (C,1,3,3): col0 = w, col2 = -w
    C = w.shape[0]
    z = jnp.zeros((C, 1, 9), dtype=w.dtype)
    z = z.at[:, :, jnp.array([0, 3, 6])].set(w)
    z = z.at[:, :, jnp.array([2, 5, 8])].set(-w)
    return z.reshape(C, 1, 3, 3)


def _vd_weight(w):  # (C,1,3) -> (C,1,3,3): row0 = w, row2 = -w
    C = w.shape[0]
    z = jnp.zeros((C, 1, 9), dtype=w.dtype)
    z = z.at[:, :, jnp.array([0, 1, 2])].set(w)
    z = z.at[:, :, jnp.array([6, 7, 8])].set(-w)
    return z.reshape(C, 1, 3, 3)


def _separable_masks(H, W, HWp, Nb, dtype):
    """4 separable boundary masks (row dh=0, row dh=2, col dw=0, col dw=2),
    flattened per image (lane-padded to HWp with zeros) and tiled Nb times.
    Shape (4, Nb*HWp) in the compute dtype."""
    HW = H * W
    hh = jnp.arange(H)[:, None]
    ww = jnp.arange(W)[None, :]

    def flat(m):
        m = jnp.broadcast_to(m, (H, W)).reshape(HW)
        if HWp > HW:
            m = jnp.concatenate([m, jnp.zeros((HWp - HW,), m.dtype)])
        return jnp.tile(m, Nb)

    r0 = flat(hh >= 1)          # valid for taps with dh = 0
    r2 = flat(hh <= H - 2)      # valid for taps with dh = 2
    c0 = flat(ww >= 1)          # valid for taps with dw = 0
    c2 = flat(ww <= W - 2)      # valid for taps with dw = 2
    return jnp.stack([r0, r2, c0, c2], axis=0).astype(dtype)


# ---------------------------------------------------------------------------
# Fused DSEConv kernel.
# ---------------------------------------------------------------------------
def _make_dse_kernel(C, W, Lb):
    # tap (dh, dw) reads x_flat[i + (dh-1)*W + (dw-1)]; pltpu.roll gives
    # y[i] = x[(i - shift) mod Lb] so shift = (1-dh)*W + (1-dw) (mod Lb).
    taps = [(dh, dw) for dh in range(3) for dw in range(3)]   # raster order = weight order
    shifts = [((1 - dh) * W + (1 - dw)) % Lb for dh, dw in taps]

    def kernel(masks_ref, w1_ref, b1_ref, w2_ref, b2_ref, x_ref, o_ref, taps_ref):
        x = x_ref[...]                            # (C, Lb) in input dtype (bf16-ready)

        r0 = masks_ref[0:1, :]
        r2 = masks_ref[1:2, :]
        c0 = masks_ref[2:3, :]
        c2 = masks_ref[3:4, :]
        # Per-tap boundary masks, hoisted once and reused by BOTH convs.
        # Center tap (1,1) needs no mask.  These masks are required for
        # correctness: they also cancel circular-roll wraparound and
        # cross-image bleed on the packed lane axis.
        tap_masks = [
            r0 * c0, r0,   r0 * c2,
            c0,      None, c2,
            r2 * c0, r2,   r2 * c2,
        ]

        def build_taps(z):
            # Stack the 9 masked/rolled taps into the (9C, Lb) scratch so the
            # whole conv is one MXU matmul with contraction depth 9C.
            for k in range(9):
                s = shifts[k]
                tap = z if s == 0 else pltpu.roll(z, shift=s, axis=1)
                m = tap_masks[k]
                if m is not None:
                    tap = tap * m
                taps_ref[k * C:(k + 1) * C, :] = tap

        xf = x.astype(jnp.float32)

        # conv1 = pointwise(depthwise(x)) folded into one full 3x3 conv.
        build_taps(x)
        y1 = jnp.dot(w1_ref[...], taps_ref[...],
                     preferred_element_type=jnp.float32) + b1_ref[...]
        t = _gelu_tanh(y1) + xf                   # GELU + first residual (f32)

        # convout: second full 3x3 conv (taps scratch reused -> lower VMEM peak).
        build_taps(t.astype(x.dtype))
        y2 = jnp.dot(w2_ref[...], taps_ref[...],
                     preferred_element_type=jnp.float32) + b2_ref[...]
        o_ref[...] = (y2 + xf).astype(o_ref.dtype)   # second residual

    return kernel


def dse_conv_forward(x_nhwc, params):
    """DSEConv forward. x_nhwc: (N, H, W, C) -> (N, H, W, C)."""
    N, H, W, C = x_nhwc.shape
    dtype = x_nhwc.dtype
    f32 = jnp.float32
    HW = H * W
    HWp = ((HW + 127) // 128) * 128              # lane-pad each image to mult. of 128

    # ---- fold the four depthwise convs + the pointwise conv into one 3x3 conv ----
    w_dw4 = (_cd_weight(params["w_cd"]) + _hd_weight(params["w_hd"])
             + _vd_weight(params["w_vd"]) + params["w_c4"])               # (C,1,3,3)
    b_dw = (params["b_cd"] + params["b_hd"]
            + params["b_vd"] + params["b_c4"]).astype(f32)                # (C,)
    w_dw = w_dw4.reshape(C, 9).astype(f32)

    wp = params["w_pw"].reshape(C, C).astype(f32)                         # (C_out, C_in)
    bp = params["b_pw"].astype(f32)
    w1 = wp[:, :, None] * w_dw[None, :, :]                                # (Co, Ci, 9)
    # stacked MXU layout: w[c_out, k*C + c_in] matches the taps-scratch ordering
    w1_stacked = jnp.transpose(w1, (0, 2, 1)).reshape(C, 9 * C).astype(dtype)
    b1 = (bp + wp @ b_dw).reshape(C, 1)                                   # f32

    w2 = params["w_out"].reshape(C, C, 9).astype(f32)
    w2_stacked = jnp.transpose(w2, (0, 2, 1)).reshape(C, 9 * C).astype(dtype)
    b2 = params["b_out"].astype(f32).reshape(C, 1)                        # f32

    # ---- pack whole images along the lane axis (amortize per-step overhead) ----
    if HWp >= 1024:
        Nb = 1
    else:
        Nb = int(max(1, min(N, 1024 // HWp)))
    G = -(-N // Nb)                      # grid steps
    Npad = G * Nb
    Lb = Nb * HWp                        # lane width of one block (multiple of 128)

    # in-kernel layout (C, Npad*HWp): channels on sublanes, batch*spatial on lanes
    xc = jnp.transpose(x_nhwc, (3, 0, 1, 2)).reshape(C, N, HW)
    if HWp > HW or Npad > N:
        xc = jnp.pad(xc, ((0, 0), (0, Npad - N), (0, HWp - HW)))
    x_flat = xc.reshape(C, Npad * HWp)

    masks = _separable_masks(H, W, HWp, Nb, dtype)                        # (4, Lb)

    kernel = _make_dse_kernel(C, W, Lb)

    itemsize = jnp.dtype(dtype).itemsize
    blk = C * Lb
    footprint = (2 * 2 * blk * itemsize          # double-buffered in/out blocks
                 + 9 * blk * itemsize            # stacked-tap scratch
                 + 4 * blk * 4                   # f32 temporaries (xf, y1, t, y2)
                 + 2 * 4 * Lb * itemsize         # masks (double-buffered)
                 + 4 * (2 * 9 * C * C * itemsize + 2 * C * 4))            # weights/biases
    vmem_limit = int(min(max(2 * footprint, 16 * 2 ** 20), 64 * 2 ** 20))

    cost = pl.CostEstimate(
        flops=int(2 * (2 * C * (9 * C) * Npad * HWp) + 12 * C * Npad * HWp),
        transcendentals=int(C * Npad * HWp),
        bytes_accessed=int(itemsize * (2 * C * Npad * HWp + 4 * Lb + 2 * 9 * C * C)
                           + 4 * 2 * C),
    )

    out_flat = pl.pallas_call(
        kernel,
        out_shape=jax.ShapeDtypeStruct((C, Npad * HWp), dtype),
        grid_spec=pltpu.PrefetchScalarGridSpec(
            num_scalar_prefetch=0,
            grid=(G,),
            in_specs=[
                pl.BlockSpec((4, Lb), lambda b: (0, 0)),        # separable pad masks
                pl.BlockSpec((C, 9 * C), lambda b: (0, 0)),     # conv1 stacked weight
                pl.BlockSpec((C, 1), lambda b: (0, 0)),         # conv1 bias (f32)
                pl.BlockSpec((C, 9 * C), lambda b: (0, 0)),     # convout stacked weight
                pl.BlockSpec((C, 1), lambda b: (0, 0)),         # convout bias (f32)
                pl.BlockSpec((C, Lb), lambda b: (0, b)),        # packed image block
            ],
            out_specs=pl.BlockSpec((C, Lb), lambda b: (0, b)),
            scratch_shapes=[pltpu.VMEM((9 * C, Lb), dtype)],    # stacked-tap buffer
        ),
        compiler_params=pltpu.CompilerParams(
            dimension_semantics=("parallel",),
            vmem_limit_bytes=vmem_limit,
        ),
        cost_estimate=cost,
    )(masks, w1_stacked, b1, w2_stacked, b2, x_flat)

    # unpack: (C, Npad*HWp) -> (N, H, W, C)
    out = out_flat.reshape(C, Npad, HWp)[:, :N, :HW].reshape(C, N, H, W)
    return jnp.transpose(out, (1, 2, 3, 0))


# ---------------------------------------------------------------------------
# Parameter init (mimics PyTorch Conv default uniform(-1/sqrt(fan_in), ...)).
# ---------------------------------------------------------------------------
def init_dse_params(key, dim, dtype=jnp.float32):
    keys = jax.random.split(key, 12)

    def u(k, shape, fan_in):
        b = 1.0 / math.sqrt(fan_in)
        return jax.random.uniform(k, shape, dtype=dtype, minval=-b, maxval=b)

    return {
        "w_cd": u(keys[0], (dim, 1, 3, 3), 9),
        "b_cd": u(keys[1], (dim,), 9),
        "w_hd": u(keys[2], (dim, 1, 3), 3),
        "b_hd": u(keys[3], (dim,), 3),
        "w_vd": u(keys[4], (dim, 1, 3), 3),
        "b_vd": u(keys[5], (dim,), 3),
        "w_c4": u(keys[6], (dim, 1, 3, 3), 9),
        "b_c4": u(keys[7], (dim,), 9),
        "w_pw": u(keys[8], (dim, dim, 1, 1), dim),
        "b_pw": u(keys[9], (dim,), dim),
        "w_out": u(keys[10], (dim, dim, 3, 3), dim * 9),
        "b_out": u(keys[11], (dim,), dim * 9),
    }


# ---------------------------------------------------------------------------
# Plain-JAX reference (unfused, matches the PyTorch forward step by step).
# ---------------------------------------------------------------------------
def dse_conv_reference(x_nhwc, params):
    N, H, W, C = x_nhwc.shape
    f32 = jnp.float32
    x = jnp.transpose(x_nhwc, (0, 3, 1, 2)).astype(f32)  # NCHW

    w_dw = (_cd_weight(params["w_cd"]) + _hd_weight(params["w_hd"])
            + _vd_weight(params["w_vd"]) + params["w_c4"]).astype(f32)   # (C,1,3,3)
    b_dw = (params["b_cd"] + params["b_hd"]
            + params["b_vd"] + params["b_c4"]).astype(f32)

    dn = ("NCHW", "OIHW", "NCHW")
    res = jax.lax.conv_general_dilated(
        x, w_dw, window_strides=(1, 1), padding=((1, 1), (1, 1)),
        dimension_numbers=dn, feature_group_count=C)
    res = res + b_dw[None, :, None, None]

    wp = params["w_pw"].reshape(C, C).astype(f32)
    res = jnp.einsum("oi,nihw->nohw", wp, res)
    res = res + params["b_pw"].astype(f32)[None, :, None, None]
    res = jax.nn.gelu(res, approximate=True)
    res = res + x

    res = jax.lax.conv_general_dilated(
        res, params["w_out"].astype(f32), window_strides=(1, 1),
        padding=((1, 1), (1, 1)), dimension_numbers=dn)
    res = res + params["b_out"].astype(f32)[None, :, None, None]
    res = res + x
    return jnp.transpose(res, (0, 2, 3, 1)).astype(x_nhwc.dtype)


if __name__ == "__main__":
    key = jax.random.PRNGKey(0)
    k_x, k_p = jax.random.split(key)

    N, H, W, dim = 2, 16, 16, 4
    x = jax.random.normal(k_x, (N, H, W, dim), dtype=jnp.float32)
    params = init_dse_params(k_p, dim)

    y = dse_conv_forward(x, params)
    y = jax.block_until_ready(y)

    y_ref = dse_conv_reference(x, params)
    assert y.shape == (N, H, W, dim)
    err = float(jnp.max(jnp.abs(y - y_ref)))
    assert err < 1e-3, f"max abs err {err}"

    print("KERNEL_OK")
</pallas_src>

<mosaic_0001>
module attributes {stable_mosaic.version = 11 : i64} {
  func.func @kernel(%arg0: i32, %arg1: memref<4x512xf32, #tpu.memory_space<vmem>>, %arg2: memref<4x36xf32, #tpu.memory_space<vmem>>, %arg3: memref<4x1xf32, #tpu.memory_space<vmem>>, %arg4: memref<4x36xf32, #tpu.memory_space<vmem>>, %arg5: memref<4x1xf32, #tpu.memory_space<vmem>>, %arg6: memref<4x512xf32, #tpu.memory_space<vmem>>, %arg7: memref<4x512xf32, #tpu.memory_space<vmem>>, %arg8: memref<36x512xf32, #tpu.memory_space<vmem>>) attributes {dimension_semantics = [#tpu.dimension_semantics<parallel>], iteration_bounds = array<i64: 1>, scalar_prefetch = 0 : i64, scratch_operands = 1 : i64, tpu.core_type = #tpu.core_type<tc>, window_params = [{pipeline_mode = #tpu.pipeline_mode<synchronous>, transform_indices = @transform_0, window_bounds = array<i64: 4, 512>}, {pipeline_mode = #tpu.pipeline_mode<synchronous>, transform_indices = @transform_1, window_bounds = array<i64: 4, 36>}, {pipeline_mode = #tpu.pipeline_mode<synchronous>, transform_indices = @transform_2, window_bounds = array<i64: 4, 1>}, {pipeline_mode = #tpu.pipeline_mode<synchronous>, transform_indices = @transform_3, window_bounds = array<i64: 4, 36>}, {pipeline_mode = #tpu.pipeline_mode<synchronous>, transform_indices = @transform_4, window_bounds = array<i64: 4, 1>}, {transform_indices = @transform_5, window_bounds = array<i64: 4, 512>}, {transform_indices = @transform_6, window_bounds = array<i64: 4, 512>}]} {
    %c0 = arith.constant 0 : index
    %c0_0 = arith.constant 0 : index
    %0 = vector.load %arg6[%c0, %c0_0] : memref<4x512xf32, #tpu.memory_space<vmem>>, vector<4x512xf32>
    %c0_1 = arith.constant 0 : index
    %c0_2 = arith.constant 0 : index
    %1 = vector.load %arg1[%c0_1, %c0_2] : memref<4x512xf32, #tpu.memory_space<vmem>>, vector<1x512xf32>
    %c1 = arith.constant 1 : index
    %c0_3 = arith.constant 0 : index
    %2 = vector.load %arg1[%c1, %c0_3] : memref<4x512xf32, #tpu.memory_space<vmem>>, vector<1x512xf32>
    %c2 = arith.constant 2 : index
    %c0_4 = arith.constant 0 : index
    %3 = vector.load %arg1[%c2, %c0_4] : memref<4x512xf32, #tpu.memory_space<vmem>>, vector<1x512xf32>
    %c3 = arith.constant 3 : index
    %c0_5 = arith.constant 0 : index
    %4 = vector.load %arg1[%c3, %c0_5] : memref<4x512xf32, #tpu.memory_space<vmem>>, vector<1x512xf32>
    %5 = arith.mulf %1, %3 : vector<1x512xf32>
    %6 = arith.mulf %1, %4 : vector<1x512xf32>
    %7 = arith.mulf %2, %3 : vector<1x512xf32>
    %8 = arith.mulf %2, %4 : vector<1x512xf32>
    %c17_i32 = arith.constant 17 : i32
    %9 = tpu.dynamic_rotate %0 by %c17_i32 dim 1 : vector<4x512xf32>, i32 -> vector<4x512xf32>
    %10 = vector.broadcast %5 : vector<1x512xf32> to vector<4x512xf32>
    %11 = arith.mulf %9, %10 : vector<4x512xf32>
    %c0_6 = arith.constant 0 : index
    %c0_7 = arith.constant 0 : index
    %12 = vector.load %arg8[%c0_6, %c0_7] : memref<36x512xf32, #tpu.memory_space<vmem>>, vector<4x512xf32>
    tpu.vector_store %arg8[%c0_6, %c0_7], %11 {strides = array<i32>} : memref<36x512xf32, #tpu.memory_space<vmem>>, vector<4x512xf32>,
    %c16_i32 = arith.constant 16 : i32
    %13 = tpu.dynamic_rotate %0 by %c16_i32 dim 1 : vector<4x512xf32>, i32 -> vector<4x512xf32>
    %14 = vector.broadcast %1 : vector<1x512xf32> to vector<4x512xf32>
    %15 = arith.mulf %13, %14 : vector<4x512xf32>
    %c4 = arith.constant 4 : index
    %c0_8 = arith.constant 0 : index
    %16 = vector.load %arg8[%c4, %c0_8] : memref<36x512xf32, #tpu.memory_space<vmem>>, vector<4x512xf32>
    tpu.vector_store %arg8[%c4, %c0_8], %15 {strides = array<i32>} : memref<36x512xf32, #tpu.memory_space<vmem>>, vector<4x512xf32>,
    %c15_i32 = arith.constant 15 : i32
    %17 = tpu.dynamic_rotate %0 by %c15_i32 dim 1 : vector<4x512xf32>, i32 -> vector<4x512xf32>
    %18 = vector.broadcast %6 : vector<1x512xf32> to vector<4x512xf32>
    %19 = arith.mulf %17, %18 : vector<4x512xf32>
    %c8 = arith.constant 8 : index
    %c0_9 = arith.constant 0 : index
    %20 = vector.load %arg8[%c8, %c0_9] : memref<36x512xf32, #tpu.memory_space<vmem>>, vector<4x512xf32>
    tpu.vector_store %arg8[%c8, %c0_9], %19 {strides = array<i32>} : memref<36x512xf32, #tpu.memory_space<vmem>>, vector<4x512xf32>,
    %c1_i32 = arith.constant 1 : i32
    %21 = tpu.dynamic_rotate %0 by %c1_i32 dim 1 : vector<4x512xf32>, i32 -> vector<4x512xf32>
    %22 = vector.broadcast %3 : vector<1x512xf32> to vector<4x512xf32>
    %23 = arith.mulf %21, %22 : vector<4x512xf32>
    %c12 = arith.constant 12 : index
    %c0_10 = arith.constant 0 : index
    %24 = vector.load %arg8[%c12, %c0_10] : memref<36x512xf32, #tpu.memory_space<vmem>>, vector<4x512xf32>
    tpu.vector_store %arg8[%c12, %c0_10], %23 {strides = array<i32>} : memref<36x512xf32, #tpu.memory_space<vmem>>, vector<4x512xf32>,
    %c16 = arith.constant 16 : index
    %c0_11 = arith.constant 0 : index
    %25 = vector.load %arg8[%c16, %c0_11] : memref<36x512xf32, #tpu.memory_space<vmem>>, vector<4x512xf32>
    tpu.vector_store %arg8[%c16, %c0_11], %0 {strides = array<i32>} : memref<36x512xf32, #tpu.memory_space<vmem>>, vector<4x512xf32>,
    %c511_i32 = arith.constant 511 : i32
    %26 = tpu.dynamic_rotate %0 by %c511_i32 dim 1 : vector<4x512xf32>, i32 -> vector<4x512xf32>
    %27 = vector.broadcast %4 : vector<1x512xf32> to vector<4x512xf32>
    %28 = arith.mulf %26, %27 : vector<4x512xf32>
    %c20 = arith.constant 20 : index
    %c0_12 = arith.constant 0 : index
    %29 = vector.load %arg8[%c20, %c0_12] : memref<36x512xf32, #tpu.memory_space<vmem>>, vector<4x512xf32>
    tpu.vector_store %arg8[%c20, %c0_12], %28 {strides = array<i32>} : memref<36x512xf32, #tpu.memory_space<vmem>>, vector<4x512xf32>,
    %c497_i32 = arith.constant 497 : i32
    %30 = tpu.dynamic_rotate %0 by %c497_i32 dim 1 : vector<4x512xf32>, i32 -> vector<4x512xf32>
    %31 = vector.broadcast %7 : vector<1x512xf32> to vector<4x512xf32>
    %32 = arith.mulf %30, %31 : vector<4x512xf32>
    %c24 = arith.constant 24 : index
    %c0_13 = arith.constant 0 : index
    %33 = vector.load %arg8[%c24, %c0_13] : memref<36x512xf32, #tpu.memory_space<vmem>>, vector<4x512xf32>
    tpu.vector_store %arg8[%c24, %c0_13], %32 {strides = array<i32>} : memref<36x512xf32, #tpu.memory_space<vmem>>, vector<4x512xf32>,
    %c496_i32 = arith.constant 496 : i32
    %34 = tpu.dynamic_rotate %0 by %c496_i32 dim 1 : vector<4x512xf32>, i32 -> vector<4x512xf32>
    %35 = vector.broadcast %2 : vector<1x512xf32> to vector<4x512xf32>
    %36 = arith.mulf %34, %35 : vector<4x512xf32>
    %c28 = arith.constant 28 : index
    %c0_14 = arith.constant 0 : index
    %37 = vector.load %arg8[%c28, %c0_14] : memref<36x512xf32, #tpu.memory_space<vmem>>, vector<4x512xf32>
    tpu.vector_store %arg8[%c28, %c0_14], %36 {strides = array<i32>} : memref<36x512xf32, #tpu.memory_space<vmem>>, vector<4x512xf32>,
    %c495_i32 = arith.constant 495 : i32
    %38 = tpu.dynamic_rotate %0 by %c495_i32 dim 1 : vector<4x512xf32>, i32 -> vector<4x512xf32>
    %39 = vector.broadcast %8 : vector<1x512xf32> to vector<4x512xf32>
    %40 = arith.mulf %38, %39 : vector<4x512xf32>
    %c32 = arith.constant 32 : index
    %c0_15 = arith.constant 0 : index
    %41 = vector.load %arg8[%c32, %c0_15] : memref<36x512xf32, #tpu.memory_space<vmem>>, vector<4x512xf32>
    tpu.vector_store %arg8[%c32, %c0_15], %40 {strides = array<i32>} : memref<36x512xf32, #tpu.memory_space<vmem>>, vector<4x512xf32>,
    %c0_16 = arith.constant 0 : index
    %c0_17 = arith.constant 0 : index
    %42 = vector.load %arg2[%c0_16, %c0_17] : memref<4x36xf32, #tpu.memory_space<vmem>>, vector<4x36xf32>
    %c0_18 = arith.constant 0 : index
    %c0_19 = arith.constant 0 : index
    %43 = vector.load %arg8[%c0_18, %c0_19] : memref<36x512xf32, #tpu.memory_space<vmem>>, vector<36x512xf32>
    %cst = arith.constant dense<0.000000e+00> : vector<4x512xf32>
    %44 = tpu.matmul %42, %43, %cst {dimension_numbers = #tpu.dot_dimension_numbers<[1], [0], [0], [1], [0, 0, 1, 1], [], []>} : vector<4x36xf32>, vector<36x512xf32>, vector<4x512xf32> -> vector<4x512xf32>
    %c0_20 = arith.constant 0 : index
    %c0_21 = arith.constant 0 : index
    %45 = vector.load %arg3[%c0_20, %c0_21] : memref<4x1xf32, #tpu.memory_space<vmem>>, vector<4x1xf32>
    %46 = vector.broadcast %45 : vector<4x1xf32> to vector<4x512xf32>
    %47 = arith.addf %44, %46 : vector<4x512xf32>
    %cst_22 = arith.constant 5.000000e-01 : f32
    %48 = vector.broadcast %cst_22 : f32 to vector<4x512xf32>
    %49 = arith.mulf %48, %47 : vector<4x512xf32>
    %cst_23 = arith.constant 4.471500e-02 : f32
    %50 = vector.broadcast %cst_23 : f32 to vector<4x512xf32>
    %51 = arith.mulf %50, %47 : vector<4x512xf32>
    %52 = arith.mulf %51, %47 : vector<4x512xf32>
    %53 = arith.mulf %52, %47 : vector<4x512xf32>
    %54 = arith.addf %47, %53 : vector<4x512xf32>
    %cst_24 = arith.constant 0.797884583 : f32
    %55 = vector.broadcast %cst_24 : f32 to vector<4x512xf32>
    %56 = arith.mulf %55, %54 : vector<4x512xf32>
    %57 = math.tanh %56 : vector<4x512xf32>
    %cst_25 = arith.constant 1.000000e+00 : f32
    %58 = vector.broadcast %cst_25 : f32 to vector<4x512xf32>
    %59 = arith.addf %58, %57 : vector<4x512xf32>
    %60 = arith.mulf %49, %59 : vector<4x512xf32>
    %61 = arith.addf %60, %0 : vector<4x512xf32>
    %c17_i32_26 = arith.constant 17 : i32
    %62 = tpu.dynamic_rotate %61 by %c17_i32_26 dim 1 : vector<4x512xf32>, i32 -> vector<4x512xf32>
    %63 = vector.broadcast %5 : vector<1x512xf32> to vector<4x512xf32>
    %64 = arith.mulf %62, %63 : vector<4x512xf32>
    %c0_27 = arith.constant 0 : index
    %c0_28 = arith.constant 0 : index
    %65 = vector.load %arg8[%c0_27, %c0_28] : memref<36x512xf32, #tpu.memory_space<vmem>>, vector<4x512xf32>
    tpu.vector_store %arg8[%c0_27, %c0_28], %64 {strides = array<i32>} : memref<36x512xf32, #tpu.memory_space<vmem>>, vector<4x512xf32>,
    %c16_i32_29 = arith.constant 16 : i32
    %66 = tpu.dynamic_rotate %61 by %c16_i32_29 dim 1 : vector<4x512xf32>, i32 -> vector<4x512xf32>
    %67 = vector.broadcast %1 : vector<1x512xf32> to vector<4x512xf32>
    %68 = arith.mulf %66, %67 : vector<4x512xf32>
    %c4_30 = arith.constant 4 : index
    %c0_31 = arith.constant 0 : index
    %69 = vector.load %arg8[%c4_30, %c0_31] : memref<36x512xf32, #tpu.memory_space<vmem>>, vector<4x512xf32>
    tpu.vector_store %arg8[%c4_30, %c0_31], %68 {strides = array<i32>} : memref<36x512xf32, #tpu.memory_space<vmem>>, vector<4x512xf32>,
    %c15_i32_32 = arith.constant 15 : i32
    %70 = tpu.dynamic_rotate %61 by %c15_i32_32 dim 1 : vector<4x512xf32>, i32 -> vector<4x512xf32>
    %71 = vector.broadcast %6 : vector<1x512xf32> to vector<4x512xf32>
    %72 = arith.mulf %70, %71 : vector<4x512xf32>
    %c8_33 = arith.constant 8 : index
    %c0_34 = arith.constant 0 : index
    %73 = vector.load %arg8[%c8_33, %c0_34] : memref<36x512xf32, #tpu.memory_space<vmem>>, vector<4x512xf32>
    tpu.vector_store %arg8[%c8_33, %c0_34], %72 {strides = array<i32>} : memref<36x512xf32, #tpu.memory_space<vmem>>, vector<4x512xf32>,
    %c1_i32_35 = arith.constant 1 : i32
    %74 = tpu.dynamic_rotate %61 by %c1_i32_35 dim 1 : vector<4x512xf32>, i32 -> vector<4x512xf32>
    %75 = vector.broadcast %3 : vector<1x512xf32> to vector<4x512xf32>
    %76 = arith.mulf %74, %75 : vector<4x512xf32>
    %c12_36 = arith.constant 12 : index
    %c0_37 = arith.constant 0 : index
    %77 = vector.load %arg8[%c12_36, %c0_37] : memref<36x512xf32, #tpu.memory_space<vmem>>, vector<4x512xf32>
    tpu.vector_store %arg8[%c12_36, %c0_37], %76 {strides = array<i32>} : memref<36x512xf32, #tpu.memory_space<vmem>>, vector<4x512xf32>,
    %c16_38 = arith.constant 16 : index
    %c0_39 = arith.constant 0 : index
    %78 = vector.load %arg8[%c16_38, %c0_39] : memref<36x512xf32, #tpu.memory_space<vmem>>, vector<4x512xf32>
    tpu.vector_store %arg8[%c16_38, %c0_39], %61 {strides = array<i32>} : memref<36x512xf32, #tpu.memory_space<vmem>>, vector<4x512xf32>,
    %c511_i32_40 = arith.constant 511 : i32
    %79 = tpu.dynamic_rotate %61 by %c511_i32_40 dim 1 : vector<4x512xf32>, i32 -> vector<4x512xf32>
    %80 = vector.broadcast %4 : vector<1x512xf32> to vector<4x512xf32>
    %81 = arith.mulf %79, %80 : vector<4x512xf32>
    %c20_41 = arith.constant 20 : index
    %c0_42 = arith.constant 0 : index
    %82 = vector.load %arg8[%c20_41, %c0_42] : memref<36x512xf32, #tpu.memory_space<vmem>>, vector<4x512xf32>
    tpu.vector_store %arg8[%c20_41, %c0_42], %81 {strides = array<i32>} : memref<36x512xf32, #tpu.memory_space<vmem>>, vector<4x512xf32>,
    %c497_i32_43 = arith.constant 497 : i32
    %83 = tpu.dynamic_rotate %61 by %c497_i32_43 dim 1 : vector<4x512xf32>, i32 -> vector<4x512xf32>
    %84 = vector.broadcast %7 : vector<1x512xf32> to vector<4x512xf32>
    %85 = arith.mulf %83, %84 : vector<4x512xf32>
    %c24_44 = arith.constant 24 : index
    %c0_45 = arith.constant 0 : index
    %86 = vector.load %arg8[%c24_44, %c0_45] : memref<36x512xf32, #tpu.memory_space<vmem>>, vector<4x512xf32>
    tpu.vector_store %arg8[%c24_44, %c0_45], %85 {strides = array<i32>} : memref<36x512xf32, #tpu.memory_space<vmem>>, vector<4x512xf32>,
    %c496_i32_46 = arith.constant 496 : i32
    %87 = tpu.dynamic_rotate %61 by %c496_i32_46 dim 1 : vector<4x512xf32>, i32 -> vector<4x512xf32>
    %88 = vector.broadcast %2 : vector<1x512xf32> to vector<4x512xf32>
    %89 = arith.mulf %87, %88 : vector<4x512xf32>
    %c28_47 = arith.constant 28 : index
    %c0_48 = arith.constant 0 : index
    %90 = vector.load %arg8[%c28_47, %c0_48] : memref<36x512xf32, #tpu.memory_space<vmem>>, vector<4x512xf32>
    tpu.vector_store %arg8[%c28_47, %c0_48], %89 {strides = array<i32>} : memref<36x512xf32, #tpu.memory_space<vmem>>, vector<4x512xf32>,
    %c495_i32_49 = arith.constant 495 : i32
    %91 = tpu.dynamic_rotate %61 by %c495_i32_49 dim 1 : vector<4x512xf32>, i32 -> vector<4x512xf32>
    %92 = vector.broadcast %8 : vector<1x512xf32> to vector<4x512xf32>
    %93 = arith.mulf %91, %92 : vector<4x512xf32>
    %c32_50 = arith.constant 32 : index
    %c0_51 = arith.constant 0 : index
    %94 = vector.load %arg8[%c32_50, %c0_51] : memref<36x512xf32, #tpu.memory_space<vmem>>, vector<4x512xf32>
    tpu.vector_store %arg8[%c32_50, %c0_51], %93 {strides = array<i32>} : memref<36x512xf32, #tpu.memory_space<vmem>>, vector<4x512xf32>,
    %c0_52 = arith.constant 0 : index
    %c0_53 = arith.constant 0 : index
    %95 = vector.load %arg4[%c0_52, %c0_53] : memref<4x36xf32, #tpu.memory_space<vmem>>, vector<4x36xf32>
    %c0_54 = arith.constant 0 : index
    %c0_55 = arith.constant 0 : index
    %96 = vector.load %arg8[%c0_54, %c0_55] : memref<36x512xf32, #tpu.memory_space<vmem>>, vector<36x512xf32>
    %cst_56 = arith.constant dense<0.000000e+00> : vector<4x512xf32>
    %97 = tpu.matmul %95, %96, %cst_56 {dimension_numbers = #tpu.dot_dimension_numbers<[1], [0], [0], [1], [0, 0, 1, 1], [], []>} : vector<4x36xf32>, vector<36x512xf32>, vector<4x512xf32> -> vector<4x512xf32>
    %c0_57 = arith.constant 0 : index
    %c0_58 = arith.constant 0 : index
    %98 = vector.load %arg5[%c0_57, %c0_58] : memref<4x1xf32, #tpu.memory_space<vmem>>, vector<4x1xf32>
    %99 = vector.broadcast %98 : vector<4x1xf32> to vector<4x512xf32>
    %100 = arith.addf %97, %99 : vector<4x512xf32>
    %101 = arith.addf %100, %0 : vector<4x512xf32>
    %c0_59 = arith.constant 0 : index
    %c0_60 = arith.constant 0 : index
    %102 = vector.load %arg7[%c0_59, %c0_60] : memref<4x512xf32, #tpu.memory_space<vmem>>, vector<4x512xf32>
    tpu.vector_store %arg7[%c0_59, %c0_60], %101 {strides = array<i32>} : memref<4x512xf32, #tpu.memory_space<vmem>>, vector<4x512xf32>,
    return
  }
  func.func @transform_0(%arg0: i32) -> (i32, i32) {
    %c0_i32 = arith.constant 0 : i32
    %c0_i32_0 = arith.constant 0 : i32
    %c0_i32_1 = arith.constant 0 : i32
    return %c0_i32, %c0_i32_0 : i32, i32
  }
  func.func @transform_1(%arg0: i32) -> (i32, i32) {
    %c0_i32 = arith.constant 0 : i32
    %c0_i32_0 = arith.constant 0 : i32
    %c0_i32_1 = arith.constant 0 : i32
    return %c0_i32, %c0_i32_0 : i32, i32
  }
  func.func @transform_2(%arg0: i32) -> (i32, i32) {
    %c0_i32 = arith.constant 0 : i32
    %c0_i32_0 = arith.constant 0 : i32
    %c0_i32_1 = arith.constant 0 : i32
    return %c0_i32, %c0_i32_0 : i32, i32
  }
  func.func @transform_3(%arg0: i32) -> (i32, i32) {
    %c0_i32 = arith.constant 0 : i32
    %c0_i32_0 = arith.constant 0 : i32
    %c0_i32_1 = arith.constant 0 : i32
    return %c0_i32, %c0_i32_0 : i32, i32
  }
  func.func @transform_4(%arg0: i32) -> (i32, i32) {
    %c0_i32 = arith.constant 0 : i32
    %c0_i32_0 = arith.constant 0 : i32
    %c0_i32_1 = arith.constant 0 : i32
    return %c0_i32, %c0_i32_0 : i32, i32
  }
  func.func @transform_5(%arg0: i32) -> (i32, i32) {
    %c0_i32 = arith.constant 0 : i32
    %c0_i32_0 = arith.constant 0 : i32
    return %c0_i32, %arg0 : i32, i32
  }
  func.func @transform_6(%arg0: i32) -> (i32, i32) {
    %c0_i32 = arith.constant 0 : i32
    %c0_i32_0 = arith.constant 0 : i32
    return %c0_i32, %arg0 : i32, i32
  }
}

</mosaic_0001>

<bundles_post_ra>
// kernel: tpu_custom_call.1
= control target key start
LH: loop header
LB: loop body
LE: loop exit
PB: predicated region body
PF: predicated region fallthrough
CT: control target
= control target key end

     0   :  { %11 = vsyncpa [#allocation4], 0  ;;  %s1774_s0 = inlined_call_operand.hbm [shape: f32[4,512], index: 0, kind: input, shape index: {}]   ;;  %s1775_s1 = inlined_call_operand.vmem [shape: f32[4,36], index: 1, kind: input, shape index: {}]   ;;  %s1776_s2 = inlined_call_operand.vmem [shape: f32[4,1], index: 2, kind: input, shape index: {}]   ;;  %s1777_s3 = inlined_call_operand.vmem [shape: f32[4,36], index: 3, kind: input, shape index: {}]   ;;  %s1778_s4 = inlined_call_operand.vmem [shape: f32[4,1], index: 4, kind: input, shape index: {}]   ;;  %s1779_s5 = inlined_call_operand.vmem [shape: f32[4,512], index: 5, kind: input, shape index: {}]   ;;  %s1780_s6 = inlined_call_operand.hbm [shape: f32[4,512], index: 6, kind: output, shape index: {}]  }
   0x1   :  { %12 = vsyncpa [#allocation5], 0  ;;  %s1211_s21 = smov [#allocation3]   ;;  %s1163_s25 = scalar_lea.hbm %s1774_s0, 256 }
   0x2   :  { %s19_s22 = sshll.u32 %s1211_s21, 4  ;;  %p1164_p0 = scmp.ne.s32.totalorder %s1774_s0, %s1163_s25  ;;  %s20_s22 = int_to_ptr.vmem [resolvable:$true] %s19_s22 }
   0x3   :  { %p1167_p1 = scmp.lt.u32.totalorder %s1163_s25, %s1774_s0 }
   0x5   :  { %p1169_p2 = pnand %p1167_p1, %p1164_p0 }
   0x7   :  { %1172 = shalt.err (!%p1169_p2)
}
   0x8   :  { %s1173_s30 = scalar_lea.vmem %s20_s22, 256  ;;  %p1178_p4 = scmp.lt.s32.totalorder %s20_s22, %s20_s22 }
   0x9   :  { %p1174_p3 = scmp.ne.s32.totalorder %s20_s22, %s1173_s30  ;;  %p1179_p5 = scmp.lt.s32.totalorder %s1173_s30, %s1173_s30 }
   0xb   :  { %p1180_p6 = por %p1179_p5, %p1178_p4 }
   0xd   :  { %p1181_p7 = pnand %p1180_p6, %p1174_p3 }
   0xf   :  { %1184 = shalt.err (!%p1181_p7)
}
  0x10   :  { %22 = dma.hbm_to_vmem [thread:$0]  %s1774_s0, 256, %s20_s22, [#allocation4]  }
  0x11   :  { %1207 = dma.done.wait [#allocation4], 256  }
  0x12   :  { %1208 = vsyncadd [#allocation4], 4294967040  ;;  %v1273_v0 = vld [vmem:[%s1779_s5 + $0x8] sm:$0xff]  ;;  %v1278_v1 = vld [vmem:[%s1779_s5] sm:$0xff]  ;;  %s1212_s13 = smov 16   ;;  %s1213_s0 = smov 1   ;;  %v63_v7 = vlaneseq }
  0x13   :  { %103 = vrot.lane.b32.xlu1 %v1273_v0, %s1212_s13  ;;  %251 = vst [vmem:[#allocation2 + $0x50] sm:$0xf] %v1273_v0  ;;  %99 = vrot.lane.b32.xlu0 %v1278_v1, %s1212_s13  ;;  %249 = vst [vmem:[#allocation2 + $0x40] sm:$0xf] %v1278_v1  ;;  %v1288_v2 = vcombine.high %v1273_v0, %v1273_v0  ;;  %v1292_v3 = vcombine.high %v1278_v1, %v1278_v1  ;;  %s1214_s5 = smov 17   ;;  %s1215_s14 = smov 15  }
  0x14   :  { %s1216_s15 = smov 127   ;;  %s1217_s16 = smov 112   ;;  %v1220_v4 = vmov 0.0   ;;  %v466_v5 = vld [vmem:[%s1776_s2] sm:$0xf]  ;;  %v1221_v6 = vmov 0  }
  0x15   :  { %252 = vst [vmem:[#allocation2 + $0x58] sm:$0xf] %v1288_v2  ;;  %250 = vst [vmem:[#allocation2 + $0x48] sm:$0xf] %v1292_v3  ;;  %s1218_s17 = smov 113   ;;  %s1219_s18 = smov 111   ;;  %553 = vmatprep.mubr.f32.mxu0 %v1220_v4  ;;  %624 = vmatprep.mubr.f32.mxu1 %v1220_v4 }
  0x16   :  { %1152 = vset.pattern.permute.xlu0 %v1221_v6  ;;  %v72_v8 = vshrl.u32 %v63_v7, 7  ;;  %v1361_v9 = vand.u32 127, %v63_v7  ;;  %v1367_v12 = vld [vmem:[#allocation3] ss:$4 sm:$0xf]  ;;  %vm476_vm8 = vcmask 1043456  }
  0x17   :  { %105 = vrot.lane.b32.xlu1 %v1288_v2, %s1212_s13  ;;  %195 = vrot.lane.b32.xlu0 %v1278_v1, %s1213_s0  ;;  %v1380_v18 = vld [vmem:[#allocation3 + $0x2] ss:$4 sm:$0xf]  ;;  %v1439_v55 = vld [vmem:[#allocation3 + $0x3] ss:$4 sm:$0xf] }
  0x18   :  { %v1363_v10 = vsub.s32 0, %v72_v8  ;;  %v1365_v11 = vsub.s32 3, %v72_v8  ;;  %v1369_v15 = vsub.s32 1, %v72_v8  ;;  %vm107_vm0 = vcmp.lt.s32.totalorder %v1361_v9, 16 }
  0x19   :  { %v1382_v19 = vsub.s32 2, %v72_v8  ;;  %vm203_vm1 = vcmp.lt.s32.totalorder %v1361_v9, 1  ;;  %v45_v42 = vmul.f32 %v1380_v18, %v1367_v12  ;;  %vm65_vm2 = vcmp.lt.s32.totalorder %v1361_v9, 17 }
  0x1a   :  { %v1374_v16 = vrot.slane %v1367_v12, %v1363_v10  ;;  %v1378_v17 = vrot.slane %v1367_v12, %v1365_v11  ;;  %v1391_v24 = vrot.slane %v1380_v18, %v1369_v15  ;;  %v1397_v27 = vrot.slane %v1367_v12, %v1369_v15 }
  0x1b   :  { %197 = vrot.lane.b32.xlu1 %v1292_v3, %s1213_s0  ;;  %101 = vrot.lane.b32.xlu0 %v1292_v3, %s1212_s13  ;;  %v1401_v28 = vrot.slane %v1367_v12, %v1382_v19  ;;  %v1405_v33 = vrot.slane %v1380_v18, %v1363_v10  ;;  %v1409_v34 = vrot.slane %v1380_v18, %v1382_v19  ;;  %vm161_vm3 = vcmp.lt.s32.totalorder %v1361_v9, 15 }
  0x1c   :  { %v1419_v38 = vrot.slane %v1380_v18, %v1365_v11  ;;  %v1437_v54 = vrot.slane %v45_v42, %v1369_v15  ;;  %v1444_v62 = vrot.slane %v45_v42, %v1363_v10  ;;  %v1451_v6 = vrot.slane %v45_v42, %v1365_v11 }
  0x1d   :  { %v46_v7 = vmul.f32 %v1439_v55, %v1367_v12  ;;  %vm261_vm4 = vcmp.lt.s32.totalorder %v1361_v9, 127  ;;  %vm357_vm5 = vcmp.lt.s32.totalorder %v1361_v9, 112  ;;  %vm315_vm6 = vcmp.lt.s32.totalorder %v1361_v9, 113 }
  0x1e   :  { %vm411_vm7 = vcmp.lt.s32.totalorder %v1361_v9, 111  ;;  %vm472_vm9 = vcmask 293888   ;;  %v883_v9 = vld [vmem:[%s1777_s3] sm:$0xf]  ;;  %s1222_s3 = smov [#allocation6]  }
  0x1f   :  { %201 = vrot.lane.b32.xlu1 %v1288_v2, %s1213_s0  ;;  %199 = vrot.lane.b32.xlu0 %v1273_v0, %s1213_s0  ;;  %s1087_s24 = sshll.u32 %s1222_s3, 4  ;;  %s1088_s24 = int_to_ptr.vmem [resolvable:$true] %s1087_s24 }
  0x20   :  { %s1185_s25 = scalar_lea.vmem %s1088_s24, 256  ;;  %p1190_p9 = scmp.lt.s32.totalorder %s1088_s24, %s1088_s24 }
  0x21   :  { %p1186_p8 = scmp.ne.s32.totalorder %s1088_s24, %s1185_s25  ;;  %p1191_p10 = scmp.lt.s32.totalorder %s1185_s25, %s1185_s25 }
  0x23   :  { %57 = vrot.lane.b32.xlu1 %v1292_v3, %s1214_s5  ;;  %55 = vrot.lane.b32.xlu0 %v1278_v1, %s1214_s5  ;;  %p1192_p11 = por %p1191_p10, %p1190_p9 }
  0x25   :  { %p1193_p12 = pnand %p1192_p11, %p1186_p8 }
  0x27   :  { %61 = vrot.lane.b32.xlu1 %v1288_v2, %s1214_s5  ;;  %59 = vrot.lane.b32.xlu0 %v1273_v0, %s1214_s5 }
  0x2b   :  { %155 = vrot.lane.b32.xlu1 %v1292_v3, %s1215_s14  ;;  %153 = vrot.lane.b32.xlu0 %v1278_v1, %s1215_s14 }
  0x2f   :  { %159 = vrot.lane.b32.xlu1 %v1288_v2, %s1215_s14  ;;  %157 = vrot.lane.b32.xlu0 %v1273_v0, %s1215_s14 }
  0x33   :  { %255 = vrot.lane.b32.xlu1 %v1292_v3, %s1216_s15  ;;  %253 = vrot.lane.b32.xlu0 %v1278_v1, %s1216_s15 }
  0x37   :  { %259 = vrot.lane.b32.xlu1 %v1288_v2, %s1216_s15  ;;  %257 = vrot.lane.b32.xlu0 %v1273_v0, %s1216_s15 }
  0x3b   :  { %351 = vrot.lane.b32.xlu1 %v1292_v3, %s1217_s16  ;;  %349 = vrot.lane.b32.xlu0 %v1278_v1, %s1217_s16 }
  0x3f   :  { %355 = vrot.lane.b32.xlu1 %v1288_v2, %s1217_s16  ;;  %353 = vrot.lane.b32.xlu0 %v1273_v0, %s1217_s16 }
  0x43   :  { %309 = vrot.lane.b32.xlu1 %v1292_v3, %s1218_s17  ;;  %307 = vrot.lane.b32.xlu0 %v1278_v1, %s1218_s17 }
  0x47   :  { %313 = vrot.lane.b32.xlu1 %v1288_v2, %s1218_s17  ;;  %311 = vrot.lane.b32.xlu0 %v1273_v0, %s1218_s17 }
  0x4b   :  { %405 = vrot.lane.b32.xlu1 %v1292_v3, %s1219_s18  ;;  %403 = vrot.lane.b32.xlu0 %v1278_v1, %s1219_s18 }
  0x4f   :  { %409 = vrot.lane.b32.xlu1 %v1288_v2, %s1219_s18  ;;  %407 = vrot.lane.b32.xlu0 %v1273_v0, %s1219_s18 }
  0x53   :  { %469 = vperm.xlu0 %1152, %v466_v5   ;;  %v1448_v5 = vrot.slane %v45_v42, %v1382_v19 }
  0x85   :  { %v104_v13 = vpop.permute.xlu1 %103  ;;  %v100_v14 = vpop.permute.xlu0 %99 }
  0x89   :  { %v106_v20 = vpop.permute.xlu1 %105  ;;  %v196_v21 = vpop.permute.xlu0 %195 }
  0x8a   :  { %v108_v22 = vsel %vm107_vm0, %v104_v13, %v106_v20  ;;  %v111_v23 = vsel %vm107_vm0, %v106_v20, %v100_v14 }
  0x8b   :  { %v133_v25 = vmul.f32 %v1374_v16, %v111_v23  ;;  %v136_v26 = vmul.f32 %v1378_v17, %v108_v22 }
  0x8d   :  { %v141_v29 = vrot.slane %v133_v25, 4  ;;  %v144_v30 = vrot.slane %v136_v26, 4  ;;  %v198_v31 = vpop.permute.xlu1 %197  ;;  %v102_v32 = vpop.permute.xlu0 %101  ;;  %v1466_v25 = vrot.slane %v46_v7, %v1369_v15 }
  0x8e   :  { %v206_v35 = vsel %vm203_vm1, %v196_v21, %v198_v31  ;;  %v109_v36 = vsel %vm107_vm0, %v102_v32, %v104_v13  ;;  %v110_v37 = vsel %vm107_vm0, %v100_v14, %v102_v32  ;;  %v1472_v32 = vrot.slane %v46_v7, %v1363_v10 }
  0x8f   :  { %149 = vst [vmem:[#allocation2] sm:$0xf0] %v141_v29  ;;  %152 = vst [vmem:[#allocation2 + $0x18] sm:$0xf0] %v144_v30  ;;  %v230_v39 = vmul.f32 %v1391_v24, %v206_v35  ;;  %v134_v40 = vmul.f32 %v1397_v27, %v110_v37  ;;  %v135_v41 = vmul.f32 %v1401_v28, %v109_v36 }
  0x90   :  { %v1475_v35 = vrot.slane %v46_v7, %v1382_v19  ;;  %v1478_v36 = vrot.slane %v46_v7, %v1365_v11 }
  0x91   :  { %v238_v43 = vrot.slane %v230_v39, 4  ;;  %v142_v44 = vrot.slane %v134_v40, 4  ;;  %v143_v45 = vrot.slane %v135_v41, 4  ;;  %v202_v46 = vpop.permute.xlu1 %201  ;;  %v200_v47 = vpop.permute.xlu0 %199 }
  0x92   :  { %v207_v48 = vsel %vm203_vm1, %v202_v46, %v196_v21  ;;  %v204_v49 = vsel %vm203_vm1, %v200_v47, %v202_v46  ;;  %v205_v50 = vsel %vm203_vm1, %v198_v31, %v200_v47  ;;  %v1492_v46 = vrot.slane %v1439_v55, %v1363_v10 }
  0x93   :  { %246 = vst [vmem:[#allocation2 + $0x28] sm:$0xf0] %v238_v43  ;;  %150 = vst [vmem:[#allocation2 + $0x8] sm:$0xf0] %v142_v44  ;;  %v229_v51 = vmul.f32 %v1405_v33, %v207_v48  ;;  %v231_v52 = vmul.f32 %v1409_v34, %v205_v50  ;;  %v232_v53 = vmul.f32 %v1419_v38, %v204_v49 }
  0x94   :  { %151 = vst [vmem:[#allocation2 + $0x10] sm:$0xf0] %v143_v45 }
  0x95   :  { %v237_v56 = vrot.slane %v229_v51, 4  ;;  %v239_v57 = vrot.slane %v231_v52, 4  ;;  %v240_v58 = vrot.slane %v232_v53, 4  ;;  %v58_v59 = vpop.permute.xlu1 %57  ;;  %v56_v60 = vpop.permute.xlu0 %55  ;;  %v1499_v51 = vrot.slane %v1439_v55, %v1365_v11 }
  0x96   :  { %v68_v61 = vsel %vm65_vm2, %v56_v60, %v58_v59  ;;  %v1503_v52 = vrot.slane %v1439_v55, %v1369_v15  ;;  %v1507_v53 = vrot.slane %v1439_v55, %v1382_v19 }
  0x97   :  { %245 = vst [vmem:[#allocation2 + $0x20] sm:$0xf0] %v237_v56  ;;  %247 = vst [vmem:[#allocation2 + $0x30] sm:$0xf0] %v239_v57  ;;  %v92_v63 = vmul.f32 %v1437_v54, %v68_v61 }
  0x98   :  { %248 = vst [vmem:[#allocation2 + $0x38] sm:$0xf0] %v240_v58  ;;  %v1509_v58 = vld [vmem:[#allocation3 + $0x1] ss:$4 sm:$0xf] }
  0x99   :  { %96 = vst [vmem:[#allocation2 + $0x8] sm:$0xf] %v92_v63  ;;  %v62_v8 = vpop.permute.xlu1 %61  ;;  %v60_v13 = vpop.permute.xlu0 %59 }
  0x9a   :  { %v69_v14 = vsel %vm65_vm2, %v62_v8, %v56_v60  ;;  %v66_v20 = vsel %vm65_vm2, %v60_v13, %v62_v8  ;;  %v67_v21 = vsel %vm65_vm2, %v58_v59, %v60_v13 }
  0x9b   :  { %v91_v22 = vmul.f32 %v1444_v62, %v69_v14  ;;  %v93_v23 = vmul.f32 %v1448_v5, %v67_v21  ;;  %v94_v12 = vmul.f32 %v1451_v6, %v66_v20 }
  0x9d   :  { %95 = vst [vmem:[#allocation2] sm:$0xf] %v91_v22  ;;  %97 = vst [vmem:[#allocation2 + $0x10] sm:$0xf] %v93_v23  ;;  %v156_v26 = vpop.permute.xlu1 %155  ;;  %v154_v29 = vpop.permute.xlu0 %153  ;;  %v1523_v22 = vrot.slane %v1509_v58, %v1363_v10 }
  0x9e   :  { %98 = vst [vmem:[#allocation2 + $0x18] sm:$0xf] %v94_v12  ;;  %v164_v30 = vsel %vm161_vm3, %v154_v29, %v156_v26 }
  0x9f   :  { %v188_v31 = vmul.f32 %v1466_v25, %v164_v30 }
  0xa0   :  { %v447_v56 = vld [vmem:[#allocation2 + $0x8] sm:$0xff] }
  0xa1   :  { %192 = vst [vmem:[#allocation2 + $0x28] sm:$0xf] %v188_v31  ;;  %v160_v37 = vpop.permute.xlu1 %159  ;;  %v158_v39 = vpop.permute.xlu0 %157 }
  0xa2   :  { %v165_v40 = vsel %vm161_vm3, %v160_v37, %v154_v29  ;;  %v162_v41 = vsel %vm161_vm3, %v158_v39, %v160_v37  ;;  %v163_v42 = vsel %vm161_vm3, %v156_v26, %v158_v39 }
  0xa3   :  { %v187_v43 = vmul.f32 %v1472_v32, %v165_v40  ;;  %v189_v44 = vmul.f32 %v1475_v35, %v163_v42  ;;  %v190_v45 = vmul.f32 %v1478_v36, %v162_v41 }
  0xa4   :  { %v446_v23 = vld [vmem:[#allocation2] sm:$0xff] }
  0xa5   :  { %191 = vst [vmem:[#allocation2 + $0x20] sm:$0xf] %v187_v43  ;;  %193 = vst [vmem:[#allocation2 + $0x30] sm:$0xf] %v189_v44  ;;  %v256_v47 = vpop.permute.xlu1 %255  ;;  %v254_v48 = vpop.permute.xlu0 %253  ;;  %v449_v42 = vld [vmem:[#allocation2 + $0x18] sm:$0xff]  ;;  %v448_v43 = vld [vmem:[#allocation2 + $0x10] sm:$0xff] }
  0xa6   :  { %194 = vst [vmem:[#allocation2 + $0x38] sm:$0xf] %v190_v45  ;;  %v264_v49 = vsel %vm261_vm4, %v254_v48, %v256_v47 }
  0xa7   :  { %v287_v50 = vmul.f32 %v1492_v46, %v264_v49 }
  0xa8   :  { %v451_v57 = vld [vmem:[#allocation2 + $0x28] sm:$0xff] }
  0xa9   :  { %v295_v59 = vrot.slane %v287_v50, 4  ;;  %v260_v60 = vpop.permute.xlu1 %259  ;;  %v258_v61 = vpop.permute.xlu0 %257  ;;  %v1108_v63 = vpack.c.bf16 %v451_v57, %v447_v56  ;;  %v1534_v50 = vrot.slane %v1509_v58, %v1369_v15  ;;  %v1538_v56 = vrot.slane %v1509_v58, %v1382_v19 }
  0xaa   :  { %v265_v7 = vsel %vm261_vm4, %v260_v60, %v254_v48  ;;  %v262_v8 = vsel %vm261_vm4, %v258_v61, %v260_v60  ;;  %v263_v13 = vsel %vm261_vm4, %v256_v47, %v258_v61  ;;  %v1529_v48 = vrot.slane %v1509_v58, %v1365_v11 }
  0xab   :  { %303 = vst [vmem:[#allocation2 + $0x40] sm:$0xf0] %v295_v59  ;;  %v290_v14 = vmul.f32 %v1499_v51, %v265_v7  ;;  %v288_v20 = vmul.f32 %v1503_v52, %v263_v13  ;;  %v289_v21 = vmul.f32 %v1507_v53, %v262_v8  ;;  %1109 = vmatprep.subr.bf16.mxu0 %v1108_v63 }
  0xac   :  { %v450_v12 = vld [vmem:[#allocation2 + $0x20] sm:$0xff]  ;;  %v452_v29 = vld [vmem:[#allocation2 + $0x30] sm:$0xff]  ;;  %v47_v57 = vmul.f32 %v1380_v18, %v1509_v58 }
  0xad   :  { %v453_v26 = vld [vmem:[#allocation2 + $0x38] sm:$0xff]  ;;  %v298_v30 = vrot.slane %v290_v14, 4  ;;  %v296_v31 = vrot.slane %v288_v20, 4  ;;  %v297_v37 = vrot.slane %v289_v21, 4  ;;  %v352_v39 = vpop.permute.xlu1 %351  ;;  %v350_v40 = vpop.permute.xlu0 %349  ;;  %v1110_v41 = vpack.c.bf16 %v450_v12, %v446_v23 }
  0xae   :  { %v360_v44 = vsel %vm357_vm5, %v350_v40, %v352_v39  ;;  %v1116_v45 = vpack.c.bf16 %v453_v26, %v449_v42  ;;  %v1118_v47 = vpack.c.bf16 %v452_v29, %v448_v43  ;;  %v1553_v20 = vrot.slane %v47_v57, %v1363_v10 }
  0xaf   :  { %306 = vst [vmem:[#allocation2 + $0x58] sm:$0xf0] %v298_v30  ;;  %304 = vst [vmem:[#allocation2 + $0x48] sm:$0xf0] %v296_v31  ;;  %v383_v49 = vmul.f32 %v1523_v22, %v360_v44  ;;  %1111 = vmatpush1.bf16.msra.mxu0 %v1110_v41  ;;  %v1558_v31 = vrot.slane %v47_v57, %v1365_v11  ;;  %v48_v41 = vmul.f32 %v1439_v55, %v1509_v58 }
  0xb0   :  { %305 = vst [vmem:[#allocation2 + $0x50] sm:$0xf0] %v297_v37  ;;  %1117 = vmatprep.subr.bf16.mxu1 %v1116_v45 }
  0xb1   :  { %v391_v59 = vrot.slane %v383_v49, 4  ;;  %1119 = vmatpush1.bf16.msra.mxu1 %v1118_v47  ;;  %v356_v60 = vpop.permute.xlu1 %355  ;;  %v354_v61 = vpop.permute.xlu0 %353  ;;  %v1580_v58 = vrot.slane %v48_v41, %v1363_v10 }
  0xb2   :  { %v361_v63 = vsel %vm357_vm5, %v356_v60, %v350_v40  ;;  %v358_v7 = vsel %vm357_vm5, %v354_v61, %v356_v60  ;;  %v359_v8 = vsel %vm357_vm5, %v352_v39, %v354_v61  ;;  %v1562_v39 = vrot.slane %v47_v57, %v1369_v15 }
  0xb3   :  { %399 = vst [vmem:[#allocation2 + $0x60] sm:$0xf0] %v391_v59  ;;  %v386_v13 = vmul.f32 %v1529_v48, %v361_v63  ;;  %v384_v18 = vmul.f32 %v1534_v50, %v359_v8  ;;  %v385_v14 = vmul.f32 %v1538_v56, %v358_v7  ;;  %v1565_v40 = vrot.slane %v47_v57, %v1382_v19 }
  0xb4   :  { %v1586_v7 = vrot.slane %v48_v41, %v1365_v11  ;;  %v1589_v8 = vrot.slane %v48_v41, %v1369_v15 }
  0xb5   :  { %v394_v21 = vrot.slane %v386_v13, 4  ;;  %v392_v23 = vrot.slane %v384_v18, 4  ;;  %v393_v12 = vrot.slane %v385_v14, 4  ;;  %v310_v26 = vpop.permute.xlu1 %309  ;;  %v308_v29 = vpop.permute.xlu0 %307  ;;  %v1592_v13 = vrot.slane %v48_v41, %v1382_v19 }
  0xb6   :  { %v318_v30 = vsel %vm315_vm6, %v308_v29, %v310_v26  ;;  %v455_v11 = vld [vmem:[#allocation2 + $0x48] sm:$0xff] }
  0xb7   :  { %402 = vst [vmem:[#allocation2 + $0x78] sm:$0xf0] %v394_v21  ;;  %400 = vst [vmem:[#allocation2 + $0x68] sm:$0xf0] %v392_v23  ;;  %v341_v37 = vmul.f32 %v1553_v20, %v318_v30  ;;  %v456_v30 = vld [vmem:[#allocation2 + $0x50] sm:$0xff] }
  0xb8   :  { %401 = vst [vmem:[#allocation2 + $0x70] sm:$0xf0] %v393_v12 }
  0xb9   :  { %345 = vst [vmem:[#allocation2 + $0x60] sm:$0xf] %v341_v37  ;;  %v314_v42 = vpop.permute.xlu1 %313  ;;  %v312_v43 = vpop.permute.xlu0 %311 }
  0xba   :  { %v319_v44 = vsel %vm315_vm6, %v314_v42, %v308_v29  ;;  %v316_v45 = vsel %vm315_vm6, %v312_v43, %v314_v42  ;;  %v317_v47 = vsel %vm315_vm6, %v310_v26, %v312_v43  ;;  %v457_v26 = vld [vmem:[#allocation2 + $0x58] sm:$0xff] }
  0xbb   :  { %v344_v49 = vmul.f32 %v1558_v31, %v319_v44  ;;  %v342_v57 = vmul.f32 %v1562_v39, %v317_v47  ;;  %v343_v55 = vmul.f32 %v1565_v40, %v316_v45  ;;  %v454_v45 = vld [vmem:[#allocation2 + $0x40] sm:$0xff] }
  0xbd   :  { %348 = vst [vmem:[#allocation2 + $0x78] sm:$0xf] %v344_v49  ;;  %346 = vst [vmem:[#allocation2 + $0x68] sm:$0xf] %v342_v57  ;;  %v406_v59 = vpop.permute.xlu1 %405  ;;  %v404_v60 = vpop.permute.xlu0 %403  ;;  %v445_v57 = vld [vmem:[%s1775_s1] sm:$0xf] }
  0xbe   :  { %347 = vst [vmem:[#allocation2 + $0x70] sm:$0xf] %v343_v55  ;;  %v414_v61 = vsel %vm411_vm7, %v404_v60, %v406_v59 }
  0xbf   :  { %v437_v63 = vmul.f32 %v1580_v58, %v414_v61 }
  0xc0   :  { %v458_v29 = vld [vmem:[#allocation2 + $0x60] sm:$0xff] }
  0xc1   :  { %441 = vst [vmem:[#allocation2 + $0x80] sm:$0xf] %v437_v63  ;;  %v410_v10 = vpop.permute.xlu1 %409  ;;  %v408_v18 = vpop.permute.xlu0 %407  ;;  %v1114_v49 = vpack.c.bf16 %v458_v29, %v454_v45 }
  0xc2   :  { %v415_v14 = vsel %vm411_vm7, %v410_v10, %v404_v60  ;;  %v412_v21 = vsel %vm411_vm7, %v408_v18, %v410_v10  ;;  %v413_v23 = vsel %vm411_vm7, %v406_v59, %v408_v18 }
  0xc3   :  { %v440_v12 = vmul.f32 %v1586_v7, %v415_v14  ;;  %v438_v15 = vmul.f32 %v1589_v8, %v413_v23  ;;  %v439_v19 = vmul.f32 %v1592_v13, %v412_v21 }
  0xc4   :  { %v459_v37 = vld [vmem:[#allocation2 + $0x68] sm:$0xff]  ;;  %v461_v41 = vld [vmem:[#allocation2 + $0x78] sm:$0xff] }
  0xc5   :  { %v460_v42 = vld [vmem:[#allocation2 + $0x70] sm:$0xff]  ;;  %444 = vst [vmem:[#allocation2 + $0x98] sm:$0xf] %v440_v12  ;;  %442 = vst [vmem:[#allocation2 + $0x88] sm:$0xf] %v438_v15  ;;  %v1112_v43 = vpack.c.bf16 %v459_v37, %v455_v11  ;;  %v1120_v44 = vpack.c.bf16 %v461_v41, %v457_v26 }
  0xc6   :  { %443 = vst [vmem:[#allocation2 + $0x90] sm:$0xf] %v439_v19  ;;  %v1122_v47 = vpack.c.bf16 %v460_v42, %v456_v30 }
  0xc7   :  { %1113 = vmatprep.subr.bf16.mxu0 %v1112_v43  ;;  %1121 = vmatprep.subr.bf16.mxu1 %v1120_v44 }
  0xc8   :  { %1115 = vmatpush1.bf16.msra.mxu0 %v1114_v49  ;;  %1123 = vmatpush1.bf16.msra.mxu1 %v1122_v47  ;;  %v462_v61 = vld [vmem:[#allocation2 + $0x80] sm:$0xf] }
  0xcc   :  { %v463_v55 = vld [vmem:[#allocation2 + $0x88] sm:$0xf]  ;;  %v465_v59 = vld [vmem:[#allocation2 + $0x98] sm:$0xf] }
  0xcd   :  { %v464_v60 = vld [vmem:[#allocation2 + $0x90] sm:$0xf]  ;;  %1096 = vmatprep.subr.msk.mxu0 %vm476_vm8, %v463_v55  ;;  %1099 = vmatprep.subr.msk.mxu1 %vm476_vm8, %v465_v59 }
  0xce   :  { %1097 = vmatpush1.msk.msra.mxu0 %vm476_vm8, %v462_v61  ;;  %1100 = vmatpush1.msk.msra.mxu1 %vm476_vm8, %v464_v60 }
  0xcf   :  { %1098 = vmatmul.mubr.msk.f32.vlgmr.msra.gmra.mrb[0].mxu0 %vm472_vm9, %v445_v57  ;;  %1101 = vmatmul.mubr.msk.f32.vlgmr.msra.gmra.mrb[0].mxu1 %vm472_vm9, %v445_v57 }
  0xd0   :  { %989 = vmatprep.mubr.f32.mxu0 %v1220_v4  ;;  %1060 = vmatprep.mubr.f32.mxu1 %v1220_v4 }
  0xd2   :  { %v470_v63 = vpop.permute.xlu0 %469 }
 0x1a2   :  { %v626_v10 = vpop.f32.mrb[0].mxu1  ;;  %v555_v18 = vpop.f32.mrb[0].mxu0 }
 0x1a3   :  { %v627_v14 = vadd.f32 %v626_v10, %v470_v63  ;;  %v556_v21 = vadd.f32 %v555_v18, %v470_v63  ;;  %v557_v23 = vpop.f32.mrb[1].mxu0  ;;  %v628_v11 = vpop.f32.mrb[1].mxu1 }
 0x1a4   :  { %v558_v12 = vadd.f32 %v557_v23, %v470_v63  ;;  %v629_v15 = vadd.f32 %v628_v11, %v470_v63 }
 0x1a5   :  { %v637_v19 = vmul.f32 0.044715, %v627_v14  ;;  %v635_v26 = vmul.f32 0.044715, %v556_v21  ;;  %v633_v11 = vmul.f32 0.5, %v627_v14 }
 0x1a6   :  { %v636_v29 = vmul.f32 0.044715, %v558_v12  ;;  %v638_v30 = vmul.f32 0.044715, %v629_v15 }
 0x1a7   :  { %v641_v37 = vmul.f32 %v637_v19, %v627_v14  ;;  %v639_v41 = vmul.f32 %v635_v26, %v556_v21 }
 0x1a8   :  { %v640_v42 = vmul.f32 %v636_v29, %v558_v12  ;;  %v642_v43 = vmul.f32 %v638_v30, %v629_v15  ;;  %v631_v29 = vmul.f32 0.5, %v556_v21 }
 0x1a9   :  { %v645_v44 = vmul.f32 %v641_v37, %v627_v14  ;;  %v643_v45 = vmul.f32 %v639_v41, %v556_v21 }
 0x1aa   :  { %v644_v4 = vmul.f32 %v640_v42, %v558_v12  ;;  %v646_v47 = vmul.f32 %v642_v43, %v629_v15  ;;  %v632_v42 = vmul.f32 0.5, %v558_v12 }
 0x1ab   :  { %v649_v49 = vadd.f32 %v645_v44, %v627_v14  ;;  %v647_v57 = vadd.f32 %v643_v45, %v556_v21  ;;  %v634_v45 = vmul.f32 0.5, %v629_v15 }
 0x1ac   :  { %v648_v55 = vadd.f32 %v644_v4, %v558_v12  ;;  %v650_v59 = vadd.f32 %v646_v47, %v629_v15  ;;  %v904_v12 = vld [vmem:[%s1778_s4] sm:$0xf] }
 0x1ad   :  { %v653_v60 = vmul.f32 0.7978846, %v649_v49  ;;  %v651_v61 = vmul.f32 0.7978846, %v647_v57 }
 0x1ae   :  { %v652_v10 = vmul.f32 0.7978846, %v648_v55  ;;  %v654_v63 = vmul.f32 0.7978846, %v650_v59 }
 0x1af   :  { %1155 = vtanh.f32 %v653_v60 }
 0x1b0   :  { %1157 = vtanh.f32 %v651_v61 }
 0x1b1   :  { %1159 = vtanh.f32 %v652_v10 }
 0x1b2   :  { %1161 = vtanh.f32 %v654_v63 }
 0x1b9   :  { %v1156_v18 = vpop.eup %1155 }
 0x1ba   :  { %v1158_v23 = vpop.eup %1157  ;;  %v661_v19 = vadd.f32 1.0, %v1156_v18 }
 0x1bb   :  { %v1160_v26 = vpop.eup %1159  ;;  %v659_v30 = vadd.f32 1.0, %v1158_v23 }
 0x1bc   :  { %v1162_v37 = vpop.eup %1161  ;;  %v665_v41 = vmul.f32 %v661_v19, %v633_v11  ;;  %v660_v43 = vadd.f32 1.0, %v1160_v26 }
 0x1bd   :  { %v663_v44 = vmul.f32 %v659_v30, %v631_v29  ;;  %v662_v4 = vadd.f32 1.0, %v1162_v37 }
 0x1be   :  { %v669_v47 = vadd.f32 %v665_v41, %v1273_v0  ;;  %v664_v49 = vmul.f32 %v660_v43, %v632_v42 }
 0x1bf   :  { %v667_v57 = vadd.f32 %v663_v44, %v1278_v1  ;;  %v666_v55 = vmul.f32 %v662_v4, %v634_v45 }
 0x1c0   :  { %777 = vst [vmem:[#allocation2 + $0x50] sm:$0xf] %v669_v47  ;;  %v668_v14 = vadd.f32 %v664_v49, %v1292_v3  ;;  %695 = vrot.lane.b32.xlu0 %v669_v47, %s1212_s13 }
 0x1c1   :  { %775 = vst [vmem:[#allocation2 + $0x40] sm:$0xf] %v667_v57  ;;  %v670_v21 = vadd.f32 %v666_v55, %v1288_v2  ;;  %691 = vrot.lane.b32.xlu1 %v667_v57, %s1212_s13 }
 0x1c2   :  { %776 = vst [vmem:[#allocation2 + $0x48] sm:$0xf] %v668_v14 }
 0x1c3   :  { %778 = vst [vmem:[#allocation2 + $0x58] sm:$0xf] %v670_v21 }
 0x1c4   :  { %743 = vrot.lane.b32.xlu0 %v667_v57, %s1213_s0 }
 0x1c5   :  { %693 = vrot.lane.b32.xlu1 %v668_v14, %s1212_s13 }
 0x1c8   :  { %747 = vrot.lane.b32.xlu0 %v669_v47, %s1213_s0 }
 0x1c9   :  { %697 = vrot.lane.b32.xlu1 %v670_v21, %s1212_s13 }
 0x1cc   :  { %671 = vrot.lane.b32.xlu0 %v667_v57, %s1214_s5 }
 0x1cd   :  { %745 = vrot.lane.b32.xlu1 %v668_v14, %s1213_s0 }
 0x1d0   :  { %675 = vrot.lane.b32.xlu0 %v669_v47, %s1214_s5 }
 0x1d1   :  { %749 = vrot.lane.b32.xlu1 %v670_v21, %s1213_s0 }
 0x1d4   :  { %723 = vrot.lane.b32.xlu0 %v667_v57, %s1215_s14 }
 0x1d5   :  { %673 = vrot.lane.b32.xlu1 %v668_v14, %s1214_s5 }
 0x1d8   :  { %727 = vrot.lane.b32.xlu0 %v669_v47, %s1215_s14 }
 0x1d9   :  { %677 = vrot.lane.b32.xlu1 %v670_v21, %s1214_s5 }
 0x1dc   :  { %779 = vrot.lane.b32.xlu0 %v667_v57, %s1216_s15 }
 0x1dd   :  { %725 = vrot.lane.b32.xlu1 %v668_v14, %s1215_s14 }
 0x1e0   :  { %783 = vrot.lane.b32.xlu0 %v669_v47, %s1216_s15 }
 0x1e1   :  { %729 = vrot.lane.b32.xlu1 %v670_v21, %s1215_s14 }
 0x1e4   :  { %831 = vrot.lane.b32.xlu0 %v667_v57, %s1217_s16 }
 0x1e5   :  { %781 = vrot.lane.b32.xlu1 %v668_v14, %s1216_s15 }
 0x1e8   :  { %835 = vrot.lane.b32.xlu0 %v669_v47, %s1217_s16 }
 0x1e9   :  { %785 = vrot.lane.b32.xlu1 %v670_v21, %s1216_s15 }
 0x1ec   :  { %811 = vrot.lane.b32.xlu0 %v667_v57, %s1218_s17 }
 0x1ed   :  { %833 = vrot.lane.b32.xlu1 %v668_v14, %s1217_s16 }
 0x1f0   :  { %815 = vrot.lane.b32.xlu0 %v669_v47, %s1218_s17 }
 0x1f1   :  { %837 = vrot.lane.b32.xlu1 %v670_v21, %s1217_s16 }
 0x1f4   :  { %863 = vrot.lane.b32.xlu0 %v667_v57, %s1219_s18 }
 0x1f5   :  { %813 = vrot.lane.b32.xlu1 %v668_v14, %s1218_s17 }
 0x1f8   :  { %867 = vrot.lane.b32.xlu0 %v669_v47, %s1219_s18 }
 0x1f9   :  { %817 = vrot.lane.b32.xlu1 %v670_v21, %s1218_s17 }
 0x1fc   :  { %907 = vperm.xlu0 %1152, %v904_v12  }
 0x1fd   :  { %865 = vrot.lane.b32.xlu1 %v668_v14, %s1219_s18 }
 0x201   :  { %869 = vrot.lane.b32.xlu1 %v670_v21, %s1219_s18 }
 0x232   :  { %v696_v15 = vpop.permute.xlu0 %695 }
 0x233   :  { %v692_v59 = vpop.permute.xlu1 %691 }
 0x236   :  { %v744_v60 = vpop.permute.xlu0 %743 }
 0x237   :  { %v694_v61 = vpop.permute.xlu1 %693 }
 0x238   :  { %v700_v10 = vsel %vm107_vm0, %v694_v61, %v696_v15  ;;  %v701_v63 = vsel %vm107_vm0, %v692_v59, %v694_v61 }
 0x239   :  { %v704_v18 = vmul.f32 %v701_v63, %v1397_v27  ;;  %v705_v23 = vmul.f32 %v700_v10, %v1401_v28 }
 0x23a   :  { %v748_v11 = vpop.permute.xlu0 %747 }
 0x23b   :  { %v712_v19 = vrot.slane %v704_v18, 4  ;;  %v713_v26 = vrot.slane %v705_v23, 4  ;;  %v698_v29 = vpop.permute.xlu1 %697 }
 0x23c   :  { %v699_v30 = vsel %vm107_vm0, %v696_v15, %v698_v29  ;;  %v702_v37 = vsel %vm107_vm0, %v698_v29, %v692_v59 }
 0x23d   :  { %720 = vst [vmem:[#allocation2 + $0x8] sm:$0xf0] %v712_v19  ;;  %721 = vst [vmem:[#allocation2 + $0x10] sm:$0xf0] %v713_v26  ;;  %v703_v41 = vmul.f32 %v702_v37, %v1374_v16  ;;  %v706_v42 = vmul.f32 %v699_v30, %v1378_v17 }
 0x23e   :  { %v672_v43 = vpop.permute.xlu0 %671 }
 0x23f   :  { %v711_v27 = vrot.slane %v703_v41, 4  ;;  %v714_v44 = vrot.slane %v706_v42, 4  ;;  %v746_v28 = vpop.permute.xlu1 %745 }
 0x240   :  { %v752_v45 = vsel %vm203_vm1, %v746_v28, %v748_v11  ;;  %v753_v4 = vsel %vm203_vm1, %v744_v60, %v746_v28 }
 0x241   :  { %719 = vst [vmem:[#allocation2] sm:$0xf0] %v711_v27  ;;  %722 = vst [vmem:[#allocation2 + $0x18] sm:$0xf0] %v714_v44  ;;  %v756_v47 = vmul.f32 %v753_v4, %v1391_v24  ;;  %v757_v49 = vmul.f32 %v752_v45, %v1409_v34 }
 0x242   :  { %v676_v57 = vpop.permute.xlu0 %675 }
 0x243   :  { %v764_v16 = vrot.slane %v756_v47, 4  ;;  %v765_v55 = vrot.slane %v757_v49, 4  ;;  %v750_v17 = vpop.permute.xlu1 %749 }
 0x244   :  { %v751_v14 = vsel %vm203_vm1, %v748_v11, %v750_v17  ;;  %v754_v21 = vsel %vm203_vm1, %v750_v17, %v744_v60 }
 0x245   :  { %772 = vst [vmem:[#allocation2 + $0x28] sm:$0xf0] %v764_v16  ;;  %773 = vst [vmem:[#allocation2 + $0x30] sm:$0xf0] %v765_v55  ;;  %v755_v12 = vmul.f32 %v754_v21, %v1405_v33  ;;  %v758_v15 = vmul.f32 %v751_v14, %v1419_v38 }
 0x246   :  { %v724_v59 = vpop.permute.xlu0 %723 }
 0x247   :  { %v763_v24 = vrot.slane %v755_v12, 4  ;;  %v766_v61 = vrot.slane %v758_v15, 4  ;;  %v674_v34 = vpop.permute.xlu1 %673 }
 0x248   :  { %v680_v10 = vsel %vm65_vm2, %v674_v34, %v676_v57  ;;  %v681_v63 = vsel %vm65_vm2, %v672_v43, %v674_v34 }
 0x249   :  { %771 = vst [vmem:[#allocation2 + $0x20] sm:$0xf0] %v763_v24  ;;  %774 = vst [vmem:[#allocation2 + $0x38] sm:$0xf0] %v766_v61  ;;  %v684_v60 = vmul.f32 %v681_v63, %v1437_v54  ;;  %v685_v18 = vmul.f32 %v680_v10, %v1448_v5 }
 0x24a   :  { %v728_v23 = vpop.permute.xlu0 %727 }
 0x24b   :  { %688 = vst [vmem:[#allocation2 + $0x8] sm:$0xf] %v684_v60  ;;  %689 = vst [vmem:[#allocation2 + $0x10] sm:$0xf] %v685_v18  ;;  %v678_v33 = vpop.permute.xlu1 %677 }
 0x24c   :  { %v679_v38 = vsel %vm65_vm2, %v676_v57, %v678_v33  ;;  %v682_v11 = vsel %vm65_vm2, %v678_v33, %v672_v43 }
 0x24d   :  { %v683_v19 = vmul.f32 %v682_v11, %v1444_v62  ;;  %v686_v26 = vmul.f32 %v679_v38, %v1451_v6 }
 0x24e   :  { %v780_v29 = vpop.permute.xlu0 %779 }
 0x24f   :  { %687 = vst [vmem:[#allocation2] sm:$0xf] %v683_v19  ;;  %690 = vst [vmem:[#allocation2 + $0x18] sm:$0xf] %v686_v26  ;;  %v726_v54 = vpop.permute.xlu1 %725 }
 0x250   :  { %v732_v5 = vsel %vm161_vm3, %v726_v54, %v728_v23  ;;  %v733_v30 = vsel %vm161_vm3, %v724_v59, %v726_v54 }
 0x251   :  { %v736_v37 = vmul.f32 %v733_v30, %v1466_v25  ;;  %v737_v41 = vmul.f32 %v732_v5, %v1475_v35 }
 0x252   :  { %v784_v42 = vpop.permute.xlu0 %783  ;;  %v885_v57 = vld [vmem:[#allocation2 + $0x8] sm:$0xff]  ;;  %v886_v33 = vld [vmem:[#allocation2 + $0x10] sm:$0xff] }
 0x253   :  { %740 = vst [vmem:[#allocation2 + $0x28] sm:$0xf] %v736_v37  ;;  %741 = vst [vmem:[#allocation2 + $0x30] sm:$0xf] %v737_v41  ;;  %v730_v62 = vpop.permute.xlu1 %729 }
 0x254   :  { %v731_v6 = vsel %vm161_vm3, %v728_v23, %v730_v62  ;;  %v734_v43 = vsel %vm161_vm3, %v730_v62, %v724_v59 }
 0x255   :  { %v735_v27 = vmul.f32 %v734_v43, %v1472_v32  ;;  %v738_v44 = vmul.f32 %v731_v6, %v1478_v36 }
 0x256   :  { %v832_v28 = vpop.permute.xlu0 %831  ;;  %v887_v61 = vld [vmem:[#allocation2 + $0x18] sm:$0xff] }
 0x257   :  { %739 = vst [vmem:[#allocation2 + $0x20] sm:$0xf] %v735_v27  ;;  %742 = vst [vmem:[#allocation2 + $0x38] sm:$0xf] %v738_v44  ;;  %v782_v25 = vpop.permute.xlu1 %781 }
 0x258   :  { %v788_v35 = vsel %vm261_vm4, %v782_v25, %v784_v42  ;;  %v789_v45 = vsel %vm261_vm4, %v780_v29, %v782_v25 }
 0x259   :  { %v791_v4 = vmul.f32 %v789_v45, %v1492_v46  ;;  %v792_v47 = vmul.f32 %v788_v35, %v1503_v52  ;;  %v884_v52 = vld [vmem:[#allocation2] sm:$0xff] }
 0x25a   :  { %v836_v49 = vpop.permute.xlu0 %835  ;;  %v889_v16 = vld [vmem:[#allocation2 + $0x28] sm:$0xff]  ;;  %v890_v15 = vld [vmem:[#allocation2 + $0x30] sm:$0xff] }
 0x25b   :  { %v799_v32 = vrot.slane %v791_v4, 4  ;;  %v800_v55 = vrot.slane %v792_v47, 4  ;;  %v786_v36 = vpop.permute.xlu1 %785  ;;  %v1124_v17 = vpack.c.bf16 %v889_v16, %v885_v57 }
 0x25c   :  { %v787_v14 = vsel %vm261_vm4, %v784_v42, %v786_v36  ;;  %v790_v21 = vsel %vm261_vm4, %v786_v36, %v780_v29 }
 0x25d   :  { %807 = vst [vmem:[#allocation2 + $0x40] sm:$0xf0] %v799_v32  ;;  %808 = vst [vmem:[#allocation2 + $0x48] sm:$0xf0] %v800_v55  ;;  %v793_v12 = vmul.f32 %v787_v14, %v1507_v53  ;;  %v794_v46 = vmul.f32 %v790_v21, %v1499_v51  ;;  %1125 = vmatprep.subr.bf16.mxu0 %v1124_v17  ;;  %v1134_v51 = vpack.c.bf16 %v890_v15, %v886_v33 }
 0x25e   :  { %v812_v59 = vpop.permute.xlu0 %811  ;;  %v888_v24 = vld [vmem:[#allocation2 + $0x20] sm:$0xff]  ;;  %v891_v34 = vld [vmem:[#allocation2 + $0x38] sm:$0xff] }
 0x25f   :  { %v801_v10 = vrot.slane %v793_v12, 4  ;;  %v802_v63 = vrot.slane %v794_v46, 4  ;;  %v834_v60 = vpop.permute.xlu1 %833  ;;  %v1126_v18 = vpack.c.bf16 %v888_v24, %v884_v52  ;;  %v1132_v23 = vpack.c.bf16 %v891_v34, %v887_v61 }
 0x260   :  { %v840_v38 = vsel %vm357_vm5, %v834_v60, %v836_v49  ;;  %v841_v53 = vsel %vm357_vm5, %v832_v28, %v834_v60 }
 0x261   :  { %809 = vst [vmem:[#allocation2 + $0x50] sm:$0xf0] %v801_v10  ;;  %810 = vst [vmem:[#allocation2 + $0x58] sm:$0xf0] %v802_v63  ;;  %v843_v11 = vmul.f32 %v841_v53, %v1523_v22  ;;  %v844_v19 = vmul.f32 %v840_v38, %v1534_v50  ;;  %1127 = vmatpush1.bf16.msra.mxu0 %v1126_v18  ;;  %1133 = vmatprep.subr.bf16.mxu1 %v1132_v23 }
 0x262   :  { %1135 = vmatpush1.bf16.msra.mxu1 %v1134_v51  ;;  %v816_v54 = vpop.permute.xlu0 %815 }
 0x263   :  { %v851_v26 = vrot.slane %v843_v11, 4  ;;  %v852_v29 = vrot.slane %v844_v19, 4  ;;  %v838_v5 = vpop.permute.xlu1 %837 }
 0x264   :  { %v839_v30 = vsel %vm357_vm5, %v836_v49, %v838_v5  ;;  %v842_v37 = vsel %vm357_vm5, %v838_v5, %v832_v28  ;;  %v893_v16 = vld [vmem:[#allocation2 + $0x48] sm:$0xff]  ;;  %v892_v55 = vld [vmem:[#allocation2 + $0x40] sm:$0xff] }
 0x265   :  { %859 = vst [vmem:[#allocation2 + $0x60] sm:$0xf0] %v851_v26  ;;  %860 = vst [vmem:[#allocation2 + $0x68] sm:$0xf0] %v852_v29  ;;  %v845_v41 = vmul.f32 %v839_v30, %v1538_v56  ;;  %v846_v22 = vmul.f32 %v842_v37, %v1529_v48 }
 0x266   :  { %v864_v27 = vpop.permute.xlu0 %863 }
 0x267   :  { %v853_v50 = vrot.slane %v845_v41, 4  ;;  %v854_v42 = vrot.slane %v846_v22, 4  ;;  %v814_v62 = vpop.permute.xlu1 %813 }
 0x268   :  { %v820_v6 = vsel %vm315_vm6, %v814_v62, %v816_v54  ;;  %v821_v43 = vsel %vm315_vm6, %v812_v59, %v814_v62  ;;  %v894_v52 = vld [vmem:[#allocation2 + $0x50] sm:$0xff] }
 0x269   :  { %861 = vst [vmem:[#allocation2 + $0x70] sm:$0xf0] %v853_v50  ;;  %862 = vst [vmem:[#allocation2 + $0x78] sm:$0xf0] %v854_v42  ;;  %v823_v44 = vmul.f32 %v821_v43, %v1553_v20  ;;  %v824_v28 = vmul.f32 %v820_v6, %v1562_v39 }
 0x26a   :  { %v868_v4 = vpop.permute.xlu0 %867 }
 0x26b   :  { %827 = vst [vmem:[#allocation2 + $0x60] sm:$0xf] %v823_v44  ;;  %828 = vst [vmem:[#allocation2 + $0x68] sm:$0xf] %v824_v28  ;;  %v818_v56 = vpop.permute.xlu1 %817 }
 0x26c   :  { %v819_v48 = vsel %vm315_vm6, %v816_v54, %v818_v56  ;;  %v822_v25 = vsel %vm315_vm6, %v818_v56, %v812_v59 }
 0x26d   :  { %v825_v35 = vmul.f32 %v819_v48, %v1565_v40  ;;  %v826_v45 = vmul.f32 %v822_v25, %v1558_v31 }
 0x26f   :  { %829 = vst [vmem:[#allocation2 + $0x70] sm:$0xf] %v825_v35  ;;  %830 = vst [vmem:[#allocation2 + $0x78] sm:$0xf] %v826_v45  ;;  %v866_v47 = vpop.permute.xlu1 %865 }
 0x270   :  { %v872_v20 = vsel %vm411_vm7, %v866_v47, %v868_v4  ;;  %v873_v39 = vsel %vm411_vm7, %v864_v27, %v866_v47 }
 0x271   :  { %v875_v49 = vmul.f32 %v873_v39, %v1580_v58  ;;  %v876_v57 = vmul.f32 %v872_v20, %v1589_v8  ;;  %v895_v8 = vld [vmem:[#allocation2 + $0x58] sm:$0xff] }
 0x272   :  { %v897_v32 = vld [vmem:[#allocation2 + $0x68] sm:$0xff]  ;;  %v896_v40 = vld [vmem:[#allocation2 + $0x60] sm:$0xff] }
 0x273   :  { %879 = vst [vmem:[#allocation2 + $0x80] sm:$0xf] %v875_v49  ;;  %880 = vst [vmem:[#allocation2 + $0x88] sm:$0xf] %v876_v57  ;;  %v870_v31 = vpop.permute.xlu1 %869  ;;  %v1128_v36 = vpack.c.bf16 %v897_v32, %v893_v16  ;;  %v1130_v17 = vpack.c.bf16 %v896_v40, %v892_v55 }
 0x274   :  { %v871_v14 = vsel %vm411_vm7, %v868_v4, %v870_v31  ;;  %v874_v21 = vsel %vm411_vm7, %v870_v31, %v864_v27 }
 0x275   :  { %v877_v12 = vmul.f32 %v871_v14, %v1592_v13  ;;  %v878_v58 = vmul.f32 %v874_v21, %v1586_v7  ;;  %1129 = vmatprep.subr.bf16.mxu0 %v1128_v36 }
 0x276   :  { %1131 = vmatpush1.bf16.msra.mxu0 %v1130_v17  ;;  %v899_v46 = vld [vmem:[#allocation2 + $0x78] sm:$0xff]  ;;  %v898_v15 = vld [vmem:[#allocation2 + $0x70] sm:$0xff] }
 0x277   :  { %881 = vst [vmem:[#allocation2 + $0x90] sm:$0xf] %v877_v12  ;;  %882 = vst [vmem:[#allocation2 + $0x98] sm:$0xf] %v878_v58  ;;  %v1136_v59 = vpack.c.bf16 %v899_v46, %v895_v8  ;;  %v1138_v24 = vpack.c.bf16 %v898_v15, %v894_v52 }
 0x279   :  { %1137 = vmatprep.subr.bf16.mxu1 %v1136_v59 }
 0x27a   :  { %1139 = vmatpush1.bf16.msra.mxu1 %v1138_v24  ;;  %v901_v61 = vld [vmem:[#allocation2 + $0x88] sm:$0xf]  ;;  %v900_v34 = vld [vmem:[#allocation2 + $0x80] sm:$0xf] }
 0x27b   :  { %1102 = vmatprep.subr.msk.mxu0 %vm476_vm8, %v901_v61  ;;  %v908_v10 = vpop.permute.xlu0 %907 }
 0x27c   :  { %1103 = vmatpush1.msk.msra.mxu0 %vm476_vm8, %v900_v34 }
 0x27d   :  { %1104 = vmatmul.mubr.msk.f32.vlgmr.msra.gmra.mrb[2].mxu0 %vm472_vm9, %v883_v9 }
 0x27e   :  { %v903_v7 = vld [vmem:[#allocation2 + $0x98] sm:$0xf]  ;;  %v902_v13 = vld [vmem:[#allocation2 + $0x90] sm:$0xf] }
 0x27f   :  { %1105 = vmatprep.subr.msk.mxu1 %vm476_vm8, %v903_v7 }
 0x280   :  { %1106 = vmatpush1.msk.msra.mxu1 %vm476_vm8, %v902_v13 }
 0x281   :  { %1107 = vmatmul.mubr.msk.f32.vlgmr.msra.gmra.mrb[2].mxu1 %vm472_vm9, %v883_v9 }
 0x350   :  { %v991_v63 = vpop.f32.mrb[2].mxu0 }
 0x351   :  { %v992_v60 = vadd.f32 %v991_v63, %v908_v10  ;;  %v993_v18 = vpop.f32.mrb[3].mxu0 }
 0x352   :  { %v994_v23 = vadd.f32 %v993_v18, %v908_v10 }
 0x353   :  { %v1067_v33 = vadd.f32 %v992_v60, %v1278_v1 }
 0x354   :  { %v1068_v38 = vadd.f32 %v994_v23, %v1292_v3  ;;  %v1062_v53 = vpop.f32.mrb[2].mxu1 }
 0x355   :  { %v1063_v51 = vadd.f32 %v1062_v53, %v908_v10  ;;  %v1064_v11 = vpop.f32.mrb[3].mxu1 }
 0x356   :  { %v1075_v19 = vcombine.low %v1067_v33, %v1068_v38  ;;  %v1065_v26 = vadd.f32 %v1064_v11, %v908_v10 }
 0x357   :  { %v1069_v29 = vadd.f32 %v1063_v51, %v1273_v0 }
 0x358   :  { %1079 = vst [vmem:[#allocation6] sm:$0xff] %v1075_v19  ;;  %v1070_v54 = vadd.f32 %v1065_v26, %v1288_v2 }
 0x35a   :  { %v1076_v5 = vcombine.low %v1069_v29, %v1070_v54 }
 0x35c   :  { %1080 = vst [vmem:[#allocation6 + $0x8] sm:$0xff] %v1076_v5 }
 0x35d   :  { %1196 = shalt.err (!%p1193_p12)
}
 0x35e   :  { %s1197_s28 = scalar_lea.hbm %s1780_s6, 256 }
 0x35f   :  { %p1198_p13 = scmp.ne.s32.totalorder %s1780_s6, %s1197_s28  ;;  %p1201_p0 = scmp.lt.u32.totalorder %s1197_s28, %s1780_s6 }
 0x361   :  { %p1203_p1 = pnand %p1201_p0, %p1198_p13 }
 0x363   :  { %1206 = shalt.err (!%p1203_p1)
}
 0x364   :  { %1090 = dma.vmem_to_hbm [thread:$0]  %s1088_s24, 256, %s1780_s6, [#allocation5]  }
 0x365   :  { %1209 = dma.done.wait [#allocation5], 256  }
 0x366   :  { %1210 = vsyncadd [#allocation5], 4294967040 }
 0x367   :  { %1094 = vsyncpa [#allocation4], 1 }
 0x368   :  { %1095 = vsyncpa [#allocation5], 1 }

</bundles_post_ra>
